<compile_context>
chip_gen: v7x
topology: tpu7x:2x2x1
jax: 0.10.0
libtpu: 0.0.40
codegen_flags: <defaults>
</compile_context>

<pallas_src>
import functools

import jax
import jax.numpy as jnp
import numpy as np
from jax import lax
from jax.experimental import pallas as pl
from jax.experimental.pallas import tpu as pltpu

POWER_ITERATIONS = 1
EPS = 1e-12


def _round_up(x, m):
    return (x + m - 1) // m * m


# ---------------------------------------------------------------------------
# Kernel 1: power iteration + 1/sigma (tiny; runs once per forward).
# ---------------------------------------------------------------------------
def _power_iteration_kernel(w_ref, u_ref, u_out_ref, v_out_ref, inv_sigma_ref):
    """w_ref: (Cout, K) f32, u_ref: (1, Cout) f32.  Full-array VMEM blocks."""
    w = w_ref[...]                        # (O, K) -- never transposed in VMEM
    u = u_ref[...]                        # (1, O)
    v = None
    wu = None
    for _ in range(POWER_ITERATIONS):     # static unroll
        v = jnp.dot(u, w, preferred_element_type=jnp.float32)        # (1, K)
        v = v / (jnp.sqrt(jnp.sum(v * v)) + EPS)
        # W v without materializing W^T: contract over K (A @ B^T form).
        wu = lax.dot_general(v, w, dimension_numbers=(((1,), (1,)), ((), ())),
                             preferred_element_type=jnp.float32)      # (1, O)
        u = wu / (jnp.sqrt(jnp.sum(wu * wu)) + EPS)
    sigma = jnp.sum(u * wu)               # reuses wu: no extra matmul
    u_out_ref[...] = u
    v_out_ref[...] = v
    inv_sigma_ref[...] = jnp.reshape(1.0 / sigma, (1, 1))


def _power_iteration(w_mat, u2):
    cout, k = w_mat.shape
    full = lambda shape: pl.BlockSpec(shape, lambda i: (0,) * len(shape))
    return pl.pallas_call(
        _power_iteration_kernel,
        grid=(1,),
        in_specs=[full((cout, k)), full((1, cout))],
        out_specs=(full((1, cout)), full((1, k)), full((1, 1))),
        out_shape=(
            jax.ShapeDtypeStruct((1, cout), jnp.float32),
            jax.ShapeDtypeStruct((1, k), jnp.float32),
            jax.ShapeDtypeStruct((1, 1), jnp.float32),
        ),
        compiler_params=pltpu.CompilerParams(
            dimension_semantics=("arbitrary",)),
    )(w_mat, u2)


# ---------------------------------------------------------------------------
# Kernel 2: fused im2col + conv matmul (the hot path).
#
# The spatially padded image is flattened along (H, W) with row stride Wp,
# so the input element needed by output position m = i*Wp + j for kernel tap
# (di, dj) sits at flat index m + di*Wp + dj.  Per grid step we load one
# lane-aligned window of the resident image, shift it with pltpu.roll per tap
# (the in-VMEM "im2col"), and accumulate kh*kw MXU matmuls in f32.  Output is
# produced channel-major: (tile_o sublanes, tile_m lanes) -> lane-dense vst.
# ---------------------------------------------------------------------------
def _conv_tap_kernel(w_ref, b_ref, x_ref, out_ref, *,
                     kh, kw, wp, tile_m, win_len):
    """
    w_ref   : (kh*kw, tile_o, Cin)  matmul dtype  (spectrally pre-scaled)
    b_ref   : (tile_o, 1)           f32
    x_ref   : (Cin, Mf_pad)         matmul dtype  (whole padded image, per n)
    out_ref : (tile_o, tile_m)      f32
    """
    t = pl.program_id(2)
    m0 = pl.multiple_of(t * tile_m, 128)                 # lane-aligned start
    window = x_ref[:, pl.ds(m0, win_len)]                # (Cin, win_len)

    tile_o = out_ref.shape[0]
    acc = jnp.zeros((tile_o, tile_m), jnp.float32)
    for di in range(kh):                                  # static unroll
        for dj in range(kw):
            off = di * wp + dj
            if off == 0:
                shifted = window
            else:
                # bring element `off` to lane 0 (XLU slot; hidden under MXU)
                shifted = pltpu.roll(window, shift=win_len - off, axis=1)
            rhs = shifted[:, :tile_m]                     # (Cin, tile_m)
            acc = acc + jnp.dot(w_ref[di * kw + dj], rhs,
                                preferred_element_type=jnp.float32)
    out_ref[...] = (acc + b_ref[...]).astype(out_ref.dtype)


# ---------------------------------------------------------------------------
# Wrapper
# ---------------------------------------------------------------------------
@functools.partial(jax.jit,
                   static_argnames=("kh", "kw", "pad", "matmul_dtype",
                                    "tile_m", "tile_o"))
def spectral_norm_conv_forward(x, weight, bias, u, v, *, kh=3, kw=3, pad=1,
                               matmul_dtype=jnp.bfloat16,
                               tile_m=512, tile_o=256):
    """Forward of SpectralNorm(nn.Conv2d(Cin, Cout, (kh,kw), padding=pad)).

    x:      (N, Cin, H, W)  f32 (NCHW)
    weight: (Cout, Cin, kh, kw)
    bias:   (Cout,)
    u:      (Cout,)
    v:      (Cin*kh*kw,)    (unused: the first power-iteration step rewrites v,
                             exactly as in the PyTorch module)
    Returns (out_nchw, u_new, v_new).
    """
    n, cin, h, w_sp = x.shape
    cout = weight.shape[0]
    k = cin * kh * kw

    # ---- spectral-norm stats, PyTorch K-order (Cin, KH, KW), f32 ----
    w_mat = weight.reshape(cout, k).astype(jnp.float32)
    u2 = u.reshape(1, cout).astype(jnp.float32)
    u_new, v_new, inv_sigma = _power_iteration(w_mat, u2)

    # ---- geometry (stride-1 conv) ----
    hp, wp = h + 2 * pad, w_sp + 2 * pad
    h_out, w_out = hp - kh + 1, wp - kw + 1
    halo = (kh - 1) * wp + (kw - 1)
    m_out = h_out * wp                         # flat output length (stride Wp)

    tile_m_eff = min(_round_up(tile_m, 128), _round_up(m_out, 128))
    m_out_pad = _round_up(m_out, tile_m_eff)
    win_len = _round_up(tile_m_eff + halo, 128)   # lane-multiple window

    co8 = _round_up(cout, 8)
    tile_o_eff = min(_round_up(tile_o, 8), co8)
    cout_pad = _round_up(co8, tile_o_eff)

    # ---- padded + flattened NCHW image (single fused pad/cast pass) ----
    mf_needed = m_out_pad - tile_m_eff + win_len
    extra_rows = max(0, -(-(mf_needed - hp * wp) // wp))
    mf_pad = (hp + extra_rows) * wp
    xflat = jnp.pad(x, ((0, 0), (0, 0), (pad, pad + extra_rows),
                        (pad, pad))).astype(matmul_dtype).reshape(n, cin, mf_pad)
    # TODO(synk): for very large Hp*Wp*Cin (image block > ~16 MiB) switch the
    # resident-image BlockSpec to manual haloed DMA (pl.ANY + make_async_copy).

    # ---- weight: fold 1/sigma, reorder to (tap, Cout, Cin), pad Cout to x8 ----
    w_sn = weight.astype(jnp.float32) * inv_sigma[0, 0]
    w_taps = jnp.transpose(w_sn, (2, 3, 0, 1)).reshape(kh * kw, cout, cin)
    w_taps = jnp.pad(w_taps,
                     ((0, 0), (0, cout_pad - cout), (0, 0))).astype(matmul_dtype)
    bias_p = jnp.pad(bias.astype(jnp.float32).reshape(cout, 1),
                     ((0, cout_pad - cout), (0, 0)))

    gn, go, gt = n, cout_pad // tile_o_eff, m_out_pad // tile_m_eff

    # ---- rough VMEM budget (double-buffered blocks + in-kernel temporaries) --
    itm = jnp.dtype(matmul_dtype).itemsize
    est = (2 * _round_up(cin, 8) * _round_up(mf_pad, 128) * itm        # image
           + 2 * kh * kw * tile_o_eff * _round_up(cin, 128) * itm      # weight
           + 2 * tile_o_eff * tile_m_eff * 4                           # out
           + 2 * _round_up(cin, 8) * win_len * itm                     # window
           + tile_o_eff * tile_m_eff * 4)                              # acc
    vmem_limit = int(min(max(2 * est, 32 * 2 ** 20), 64 * 2 ** 20))

    kernel = functools.partial(_conv_tap_kernel, kh=kh, kw=kw, wp=wp,
                               tile_m=tile_m_eff, win_len=win_len)
    out_t = pl.pallas_call(
        kernel,
        grid=(gn, go, gt),
        in_specs=[
            # weight taps: resident while o is fixed
            pl.BlockSpec((kh * kw, tile_o_eff, cin), lambda b, o, t: (0, o, 0)),
            pl.BlockSpec((tile_o_eff, 1), lambda b, o, t: (o, 0)),
            # whole padded image: fetched once per batch element
            pl.BlockSpec((None, cin, mf_pad), lambda b, o, t: (b, 0, 0)),
        ],
        out_specs=pl.BlockSpec((None, tile_o_eff, tile_m_eff),
                               lambda b, o, t: (b, o, t)),
        out_shape=jax.ShapeDtypeStruct((n, cout_pad, m_out_pad), jnp.float32),
        compiler_params=pltpu.CompilerParams(
            dimension_semantics=("parallel", "parallel", "parallel"),
            vmem_limit_bytes=vmem_limit),
    )(w_taps, bias_p, xflat)

    # Channel-major output needs no transpose: just trim the pad columns
    # (one fused slice).  out_t[:, o, i*Wp + j] == conv_out[:, o, i, j].
    # TODO(synk): skip this trim when the consumer accepts the Wp-strided
    # spatial layout (pad=0 makes it a free reshape).
    out = out_t[:, :cout, :m_out].reshape(n, cout, h_out, wp)[..., :w_out]
    return out, u_new.reshape(cout), v_new.reshape(k)


# ---------------------------------------------------------------------------
# Pure-JAX reference (mirrors the PyTorch module math).
# ---------------------------------------------------------------------------
def _reference(x, weight, bias, u, v, pad=1):
    cout = weight.shape[0]
    w_mat = weight.reshape(cout, -1)
    for _ in range(POWER_ITERATIONS):
        v = w_mat.T @ u
        v = v / (jnp.linalg.norm(v) + EPS)
        u = w_mat @ v
        u = u / (jnp.linalg.norm(u) + EPS)
    sigma = u @ (w_mat @ v)
    w_sn = weight / sigma
    out = lax.conv_general_dilated(
        x, w_sn, window_strides=(1, 1), padding=((pad, pad), (pad, pad)),
        dimension_numbers=("NCHW", "OIHW", "NCHW"))
    return out + bias.reshape(1, cout, 1, 1), u, v


if __name__ == "__main__":
    key = jax.random.PRNGKey(0)
    kx, kw_, kb, ku, kv = jax.random.split(key, 5)

    N, CIN, COUT, H, W, KH, KW, PAD = 2, 4, 8, 16, 16, 3, 3, 1

    x = jax.random.normal(kx, (N, CIN, H, W), dtype=jnp.float32)
    weight = 0.1 * jax.random.normal(kw_, (COUT, CIN, KH, KW), dtype=jnp.float32)
    bias = 0.05 * jax.random.normal(kb, (COUT,), dtype=jnp.float32)
    # u, v: normal(0,1) then l2-normalized (PyTorch _make_params)
    u0 = jax.random.normal(ku, (COUT,), dtype=jnp.float32)
    v0 = jax.random.normal(kv, (CIN * KH * KW,), dtype=jnp.float32)
    u0 = u0 / (jnp.linalg.norm(u0) + EPS)
    v0 = v0 / (jnp.linalg.norm(v0) + EPS)

    ref_out, ref_u, ref_v = _reference(x, weight, bias, u0, v0, pad=PAD)

    # f32 matmul path: tight match against the reference.
    out32, u32, v32 = spectral_norm_conv_forward(
        x, weight, bias, u0, v0, kh=KH, kw=KW, pad=PAD,
        matmul_dtype=jnp.float32)
    out32 = jax.block_until_ready(out32)
    np.testing.assert_allclose(np.asarray(out32), np.asarray(ref_out),
                               rtol=1e-4, atol=1e-4)
    np.testing.assert_allclose(np.asarray(u32), np.asarray(ref_u),
                               rtol=1e-4, atol=1e-4)
    np.testing.assert_allclose(np.asarray(v32), np.asarray(ref_v),
                               rtol=1e-4, atol=1e-4)

    # bf16 MXU path (default): f32 accumulation, looser elementwise tolerance.
    out_bf, u_bf, v_bf = spectral_norm_conv_forward(
        x, weight, bias, u0, v0, kh=KH, kw=KW, pad=PAD)
    out_bf = jax.block_until_ready(out_bf)
    np.testing.assert_allclose(np.asarray(out_bf), np.asarray(ref_out),
                               rtol=5e-2, atol=5e-2)
    np.testing.assert_allclose(np.asarray(u_bf), np.asarray(ref_u),
                               rtol=1e-4, atol=1e-4)
    np.testing.assert_allclose(np.asarray(v_bf), np.asarray(ref_v),
                               rtol=1e-4, atol=1e-4)

    print("KERNEL_OK")
</pallas_src>

<mosaic_0001>
module attributes {stable_mosaic.version = 11 : i64} {
  func.func @_power_iteration_kernel(%arg0: i32, %arg1: memref<8x36xf32, #tpu.memory_space<vmem>>, %arg2: memref<1x8xf32, #tpu.memory_space<vmem>>, %arg3: memref<1x8xf32, #tpu.memory_space<vmem>>, %arg4: memref<1x36xf32, #tpu.memory_space<vmem>>, %arg5: memref<1x1xf32, #tpu.memory_space<vmem>>) attributes {dimension_semantics = [#tpu.dimension_semantics<arbitrary>], iteration_bounds = array<i64: 1>, scalar_prefetch = 0 : i64, scratch_operands = 0 : i64, tpu.core_type = #tpu.core_type<tc>, window_params = [{pipeline_mode = #tpu.pipeline_mode<synchronous>, transform_indices = @transform_0, window_bounds = array<i64: 8, 36>}, {pipeline_mode = #tpu.pipeline_mode<synchronous>, transform_indices = @transform_1, window_bounds = array<i64: 1, 8>}, {pipeline_mode = #tpu.pipeline_mode<synchronous>, transform_indices = @transform_2, window_bounds = array<i64: 1, 8>}, {pipeline_mode = #tpu.pipeline_mode<synchronous>, transform_indices = @transform_3, window_bounds = array<i64: 1, 36>}, {pipeline_mode = #tpu.pipeline_mode<synchronous>, transform_indices = @transform_4, window_bounds = array<i64: 1, 1>}]} {
    %c0 = arith.constant 0 : index
    %c0_0 = arith.constant 0 : index
    %0 = vector.load %arg1[%c0, %c0_0] : memref<8x36xf32, #tpu.memory_space<vmem>>, vector<8x36xf32>
    %c0_1 = arith.constant 0 : index
    %c0_2 = arith.constant 0 : index
    %1 = vector.load %arg2[%c0_1, %c0_2] : memref<1x8xf32, #tpu.memory_space<vmem>>, vector<1x8xf32>
    %cst = arith.constant dense<0.000000e+00> : vector<1x36xf32>
    %2 = tpu.matmul %1, %0, %cst {dimension_numbers = #tpu.dot_dimension_numbers<[1], [0], [0], [1], [0, 0, 1, 1], [], []>} : vector<1x8xf32>, vector<8x36xf32>, vector<1x36xf32> -> vector<1x36xf32>
    %3 = arith.mulf %2, %2 : vector<1x36xf32>
    %4 = vector.shape_cast %3 : vector<1x36xf32> to vector<1x1x36xf32>
    %cst_3 = arith.constant dense<0.000000e+00> : vector<1xf32>
    %5 = vector.multi_reduction <add>, %4, %cst_3 [1, 2] : vector<1x1x36xf32> to vector<1xf32>
    %6 = vector.shape_cast %5 : vector<1xf32> to vector<1x1x1xf32>
    %7 = vector.extract %6[0, 0, 0] : f32 from vector<1x1x1xf32>
    %8 = math.sqrt %7 : f32
    %cst_4 = arith.constant 9.99999996E-13 : f32
    %9 = arith.addf %8, %cst_4 : f32
    %10 = vector.broadcast %9 : f32 to vector<1x36xf32>
    %11 = arith.divf %2, %10 : vector<1x36xf32>
    %cst_5 = arith.constant dense<0.000000e+00> : vector<1x8xf32>
    %12 = tpu.matmul %11, %0, %cst_5 {dimension_numbers = #tpu.dot_dimension_numbers<[1], [1], [0], [0], [0, 0, 1, 0], [], []>} : vector<1x36xf32>, vector<8x36xf32>, vector<1x8xf32> -> vector<1x8xf32>
    %13 = arith.mulf %12, %12 : vector<1x8xf32>
    %14 = vector.shape_cast %13 : vector<1x8xf32> to vector<1x1x8xf32>
    %cst_6 = arith.constant dense<0.000000e+00> : vector<1xf32>
    %15 = vector.multi_reduction <add>, %14, %cst_6 [1, 2] : vector<1x1x8xf32> to vector<1xf32>
    %16 = vector.shape_cast %15 : vector<1xf32> to vector<1x1x1xf32>
    %17 = vector.extract %16[0, 0, 0] : f32 from vector<1x1x1xf32>
    %18 = math.sqrt %17 : f32
    %cst_7 = arith.constant 9.99999996E-13 : f32
    %19 = arith.addf %18, %cst_7 : f32
    %20 = vector.broadcast %19 : f32 to vector<1x8xf32>
    %21 = arith.divf %12, %20 : vector<1x8xf32>
    %22 = arith.mulf %21, %12 : vector<1x8xf32>
    %23 = vector.shape_cast %22 : vector<1x8xf32> to vector<1x1x8xf32>
    %cst_8 = arith.constant dense<0.000000e+00> : vector<1xf32>
    %24 = vector.multi_reduction <add>, %23, %cst_8 [1, 2] : vector<1x1x8xf32> to vector<1xf32>
    %25 = vector.shape_cast %24 : vector<1xf32> to vector<1x1x1xf32>
    %26 = vector.extract %25[0, 0, 0] : f32 from vector<1x1x1xf32>
    %c0_9 = arith.constant 0 : index
    %c0_10 = arith.constant 0 : index
    %27 = vector.load %arg3[%c0_9, %c0_10] : memref<1x8xf32, #tpu.memory_space<vmem>>, vector<1x8xf32>
    tpu.vector_store %arg3[%c0_9, %c0_10], %21 {strides = array<i32>} : memref<1x8xf32, #tpu.memory_space<vmem>>, vector<1x8xf32>,
    %c0_11 = arith.constant 0 : index
    %c0_12 = arith.constant 0 : index
    %28 = vector.load %arg4[%c0_11, %c0_12] : memref<1x36xf32, #tpu.memory_space<vmem>>, vector<1x36xf32>
    tpu.vector_store %arg4[%c0_11, %c0_12], %11 {strides = array<i32>} : memref<1x36xf32, #tpu.memory_space<vmem>>, vector<1x36xf32>,
    %cst_13 = arith.constant 1.000000e+00 : f32
    %29 = arith.divf %cst_13, %26 : f32
    %30 = vector.broadcast %29 : f32 to vector<1x1xf32>
    %c0_14 = arith.constant 0 : index
    %c0_15 = arith.constant 0 : index
    %31 = vector.load %arg5[%c0_14, %c0_15] : memref<1x1xf32, #tpu.memory_space<vmem>>, vector<1x1xf32>
    tpu.vector_store %arg5[%c0_14, %c0_15], %30 {strides = array<i32>} : memref<1x1xf32, #tpu.memory_space<vmem>>, vector<1x1xf32>,
    return
  }
  func.func @transform_0(%arg0: i32) -> (i32, i32) {
    %c0_i32 = arith.constant 0 : i32
    %c0_i32_0 = arith.constant 0 : i32
    %c0_i32_1 = arith.constant 0 : i32
    return %c0_i32, %c0_i32_0 : i32, i32
  }
  func.func @transform_1(%arg0: i32) -> (i32, i32) {
    %c0_i32 = arith.constant 0 : i32
    %c0_i32_0 = arith.constant 0 : i32
    %c0_i32_1 = arith.constant 0 : i32
    return %c0_i32, %c0_i32_0 : i32, i32
  }
  func.func @transform_2(%arg0: i32) -> (i32, i32) {
    %c0_i32 = arith.constant 0 : i32
    %c0_i32_0 = arith.constant 0 : i32
    %c0_i32_1 = arith.constant 0 : i32
    return %c0_i32, %c0_i32_0 : i32, i32
  }
  func.func @transform_3(%arg0: i32) -> (i32, i32) {
    %c0_i32 = arith.constant 0 : i32
    %c0_i32_0 = arith.constant 0 : i32
    %c0_i32_1 = arith.constant 0 : i32
    return %c0_i32, %c0_i32_0 : i32, i32
  }
  func.func @transform_4(%arg0: i32) -> (i32, i32) {
    %c0_i32 = arith.constant 0 : i32
    %c0_i32_0 = arith.constant 0 : i32
    %c0_i32_1 = arith.constant 0 : i32
    return %c0_i32, %c0_i32_0 : i32, i32
  }
}

module attributes {stable_mosaic.version = 11 : i64} {
  func.func @_conv_tap_kernel(%arg0: i32, %arg1: i32, %arg2: i32, %arg3: memref<9x8x4xf32, #tpu.memory_space<vmem>>, %arg4: memref<8x1xf32, #tpu.memory_space<vmem>>, %arg5: memref<1x4x522xf32, #tpu.memory_space<vmem>>, %arg6: memref<1x8x384xf32, #tpu.memory_space<vmem>>) attributes {dimension_semantics = [#tpu.dimension_semantics<parallel>, #tpu.dimension_semantics<parallel>, #tpu.dimension_semantics<parallel>], iteration_bounds = array<i64: 2, 1, 1>, scalar_prefetch = 0 : i64, scratch_operands = 0 : i64, tpu.core_type = #tpu.core_type<tc>, window_params = [{transform_indices = @transform_0, window_bounds = array<i64: 9, 8, 4>}, {transform_indices = @transform_1, window_bounds = array<i64: 8, 1>}, {transform_indices = @transform_2, window_bounds = array<i64: 1, 4, 522>}, {transform_indices = @transform_3, window_bounds = array<i64: 1, 8, 384>}]} {
    %c384_i32 = arith.constant 384 : i32
    %0 = arith.muli %arg2, %c384_i32 : i32
    %1 = tpu.assume_multiple %0, 128 : i32
    %c0 = arith.constant 0 : index
    %c0_0 = arith.constant 0 : index
    %2 = arith.index_cast %1 : i32 to index
    %3 = vector.load %arg5[%c0, %c0_0, %2] : memref<1x4x522xf32, #tpu.memory_space<vmem>>, vector<1x4x512xf32>
    %4 = vector.shape_cast %3 : vector<1x4x512xf32> to vector<4x512xf32>
    %cst = arith.constant 0.000000e+00 : f32
    %5 = vector.broadcast %cst : f32 to vector<8x384xf32>
    %6 = vector.extract_strided_slice %4 {offsets = [0, 0], sizes = [4, 384], strides = [1, 1]} : vector<4x512xf32> to vector<4x384xf32>
    %c0_1 = arith.constant 0 : index
    %c0_2 = arith.constant 0 : index
    %c0_3 = arith.constant 0 : index
    %7 = vector.load %arg3[%c0_1, %c0_2, %c0_3] : memref<9x8x4xf32, #tpu.memory_space<vmem>>, vector<1x8x4xf32>
    %8 = vector.shape_cast %7 : vector<1x8x4xf32> to vector<8x4xf32>
    %cst_4 = arith.constant dense<0.000000e+00> : vector<8x384xf32>
    %9 = tpu.matmul %8, %6, %cst_4 {dimension_numbers = #tpu.dot_dimension_numbers<[1], [0], [0], [1], [0, 0, 1, 1], [], []>} : vector<8x4xf32>, vector<4x384xf32>, vector<8x384xf32> -> vector<8x384xf32>
    %10 = arith.addf %5, %9 : vector<8x384xf32>
    %c511_i32 = arith.constant 511 : i32
    %11 = tpu.dynamic_rotate %4 by %c511_i32 dim 1 : vector<4x512xf32>, i32 -> vector<4x512xf32>
    %12 = vector.extract_strided_slice %11 {offsets = [0, 0], sizes = [4, 384], strides = [1, 1]} : vector<4x512xf32> to vector<4x384xf32>
    %c1 = arith.constant 1 : index
    %c0_5 = arith.constant 0 : index
    %c0_6 = arith.constant 0 : index
    %13 = vector.load %arg3[%c1, %c0_5, %c0_6] : memref<9x8x4xf32, #tpu.memory_space<vmem>>, vector<1x8x4xf32>
    %14 = vector.shape_cast %13 : vector<1x8x4xf32> to vector<8x4xf32>
    %cst_7 = arith.constant dense<0.000000e+00> : vector<8x384xf32>
    %15 = tpu.matmul %14, %12, %cst_7 {dimension_numbers = #tpu.dot_dimension_numbers<[1], [0], [0], [1], [0, 0, 1, 1], [], []>} : vector<8x4xf32>, vector<4x384xf32>, vector<8x384xf32> -> vector<8x384xf32>
    %16 = arith.addf %10, %15 : vector<8x384xf32>
    %c510_i32 = arith.constant 510 : i32
    %17 = tpu.dynamic_rotate %4 by %c510_i32 dim 1 : vector<4x512xf32>, i32 -> vector<4x512xf32>
    %18 = vector.extract_strided_slice %17 {offsets = [0, 0], sizes = [4, 384], strides = [1, 1]} : vector<4x512xf32> to vector<4x384xf32>
    %c2 = arith.constant 2 : index
    %c0_8 = arith.constant 0 : index
    %c0_9 = arith.constant 0 : index
    %19 = vector.load %arg3[%c2, %c0_8, %c0_9] : memref<9x8x4xf32, #tpu.memory_space<vmem>>, vector<1x8x4xf32>
    %20 = vector.shape_cast %19 : vector<1x8x4xf32> to vector<8x4xf32>
    %cst_10 = arith.constant dense<0.000000e+00> : vector<8x384xf32>
    %21 = tpu.matmul %20, %18, %cst_10 {dimension_numbers = #tpu.dot_dimension_numbers<[1], [0], [0], [1], [0, 0, 1, 1], [], []>} : vector<8x4xf32>, vector<4x384xf32>, vector<8x384xf32> -> vector<8x384xf32>
    %22 = arith.addf %16, %21 : vector<8x384xf32>
    %c494_i32 = arith.constant 494 : i32
    %23 = tpu.dynamic_rotate %4 by %c494_i32 dim 1 : vector<4x512xf32>, i32 -> vector<4x512xf32>
    %24 = vector.extract_strided_slice %23 {offsets = [0, 0], sizes = [4, 384], strides = [1, 1]} : vector<4x512xf32> to vector<4x384xf32>
    %c3 = arith.constant 3 : index
    %c0_11 = arith.constant 0 : index
    %c0_12 = arith.constant 0 : index
    %25 = vector.load %arg3[%c3, %c0_11, %c0_12] : memref<9x8x4xf32, #tpu.memory_space<vmem>>, vector<1x8x4xf32>
    %26 = vector.shape_cast %25 : vector<1x8x4xf32> to vector<8x4xf32>
    %cst_13 = arith.constant dense<0.000000e+00> : vector<8x384xf32>
    %27 = tpu.matmul %26, %24, %cst_13 {dimension_numbers = #tpu.dot_dimension_numbers<[1], [0], [0], [1], [0, 0, 1, 1], [], []>} : vector<8x4xf32>, vector<4x384xf32>, vector<8x384xf32> -> vector<8x384xf32>
    %28 = arith.addf %22, %27 : vector<8x384xf32>
    %c493_i32 = arith.constant 493 : i32
    %29 = tpu.dynamic_rotate %4 by %c493_i32 dim 1 : vector<4x512xf32>, i32 -> vector<4x512xf32>
    %30 = vector.extract_strided_slice %29 {offsets = [0, 0], sizes = [4, 384], strides = [1, 1]} : vector<4x512xf32> to vector<4x384xf32>
    %c4 = arith.constant 4 : index
    %c0_14 = arith.constant 0 : index
    %c0_15 = arith.constant 0 : index
    %31 = vector.load %arg3[%c4, %c0_14, %c0_15] : memref<9x8x4xf32, #tpu.memory_space<vmem>>, vector<1x8x4xf32>
    %32 = vector.shape_cast %31 : vector<1x8x4xf32> to vector<8x4xf32>
    %cst_16 = arith.constant dense<0.000000e+00> : vector<8x384xf32>
    %33 = tpu.matmul %32, %30, %cst_16 {dimension_numbers = #tpu.dot_dimension_numbers<[1], [0], [0], [1], [0, 0, 1, 1], [], []>} : vector<8x4xf32>, vector<4x384xf32>, vector<8x384xf32> -> vector<8x384xf32>
    %34 = arith.addf %28, %33 : vector<8x384xf32>
    %c492_i32 = arith.constant 492 : i32
    %35 = tpu.dynamic_rotate %4 by %c492_i32 dim 1 : vector<4x512xf32>, i32 -> vector<4x512xf32>
    %36 = vector.extract_strided_slice %35 {offsets = [0, 0], sizes = [4, 384], strides = [1, 1]} : vector<4x512xf32> to vector<4x384xf32>
    %c5 = arith.constant 5 : index
    %c0_17 = arith.constant 0 : index
    %c0_18 = arith.constant 0 : index
    %37 = vector.load %arg3[%c5, %c0_17, %c0_18] : memref<9x8x4xf32, #tpu.memory_space<vmem>>, vector<1x8x4xf32>
    %38 = vector.shape_cast %37 : vector<1x8x4xf32> to vector<8x4xf32>
    %cst_19 = arith.constant dense<0.000000e+00> : vector<8x384xf32>
    %39 = tpu.matmul %38, %36, %cst_19 {dimension_numbers = #tpu.dot_dimension_numbers<[1], [0], [0], [1], [0, 0, 1, 1], [], []>} : vector<8x4xf32>, vector<4x384xf32>, vector<8x384xf32> -> vector<8x384xf32>
    %40 = arith.addf %34, %39 : vector<8x384xf32>
    %c476_i32 = arith.constant 476 : i32
    %41 = tpu.dynamic_rotate %4 by %c476_i32 dim 1 : vector<4x512xf32>, i32 -> vector<4x512xf32>
    %42 = vector.extract_strided_slice %41 {offsets = [0, 0], sizes = [4, 384], strides = [1, 1]} : vector<4x512xf32> to vector<4x384xf32>
    %c6 = arith.constant 6 : index
    %c0_20 = arith.constant 0 : index
    %c0_21 = arith.constant 0 : index
    %43 = vector.load %arg3[%c6, %c0_20, %c0_21] : memref<9x8x4xf32, #tpu.memory_space<vmem>>, vector<1x8x4xf32>
    %44 = vector.shape_cast %43 : vector<1x8x4xf32> to vector<8x4xf32>
    %cst_22 = arith.constant dense<0.000000e+00> : vector<8x384xf32>
    %45 = tpu.matmul %44, %42, %cst_22 {dimension_numbers = #tpu.dot_dimension_numbers<[1], [0], [0], [1], [0, 0, 1, 1], [], []>} : vector<8x4xf32>, vector<4x384xf32>, vector<8x384xf32> -> vector<8x384xf32>
    %46 = arith.addf %40, %45 : vector<8x384xf32>
    %c475_i32 = arith.constant 475 : i32
    %47 = tpu.dynamic_rotate %4 by %c475_i32 dim 1 : vector<4x512xf32>, i32 -> vector<4x512xf32>
    %48 = vector.extract_strided_slice %47 {offsets = [0, 0], sizes = [4, 384], strides = [1, 1]} : vector<4x512xf32> to vector<4x384xf32>
    %c7 = arith.constant 7 : index
    %c0_23 = arith.constant 0 : index
    %c0_24 = arith.constant 0 : index
    %49 = vector.load %arg3[%c7, %c0_23, %c0_24] : memref<9x8x4xf32, #tpu.memory_space<vmem>>, vector<1x8x4xf32>
    %50 = vector.shape_cast %49 : vector<1x8x4xf32> to vector<8x4xf32>
    %cst_25 = arith.constant dense<0.000000e+00> : vector<8x384xf32>
    %51 = tpu.matmul %50, %48, %cst_25 {dimension_numbers = #tpu.dot_dimension_numbers<[1], [0], [0], [1], [0, 0, 1, 1], [], []>} : vector<8x4xf32>, vector<4x384xf32>, vector<8x384xf32> -> vector<8x384xf32>
    %52 = arith.addf %46, %51 : vector<8x384xf32>
    %c474_i32 = arith.constant 474 : i32
    %53 = tpu.dynamic_rotate %4 by %c474_i32 dim 1 : vector<4x512xf32>, i32 -> vector<4x512xf32>
    %54 = vector.extract_strided_slice %53 {offsets = [0, 0], sizes = [4, 384], strides = [1, 1]} : vector<4x512xf32> to vector<4x384xf32>
    %c8 = arith.constant 8 : index
    %c0_26 = arith.constant 0 : index
    %c0_27 = arith.constant 0 : index
    %55 = vector.load %arg3[%c8, %c0_26, %c0_27] : memref<9x8x4xf32, #tpu.memory_space<vmem>>, vector<1x8x4xf32>
    %56 = vector.shape_cast %55 : vector<1x8x4xf32> to vector<8x4xf32>
    %cst_28 = arith.constant dense<0.000000e+00> : vector<8x384xf32>
    %57 = tpu.matmul %56, %54, %cst_28 {dimension_numbers = #tpu.dot_dimension_numbers<[1], [0], [0], [1], [0, 0, 1, 1], [], []>} : vector<8x4xf32>, vector<4x384xf32>, vector<8x384xf32> -> vector<8x384xf32>
    %58 = arith.addf %52, %57 : vector<8x384xf32>
    %c0_29 = arith.constant 0 : index
    %c0_30 = arith.constant 0 : index
    %59 = vector.load %arg4[%c0_29, %c0_30] : memref<8x1xf32, #tpu.memory_space<vmem>>, vector<8x1xf32>
    %60 = vector.broadcast %59 : vector<8x1xf32> to vector<8x384xf32>
    %61 = arith.addf %58, %60 : vector<8x384xf32>
    %c0_31 = arith.constant 0 : index
    %c0_32 = arith.constant 0 : index
    %c0_33 = arith.constant 0 : index
    %62 = vector.load %arg6[%c0_31, %c0_32, %c0_33] : memref<1x8x384xf32, #tpu.memory_space<vmem>>, vector<1x8x384xf32>
    %63 = vector.shape_cast %62 : vector<1x8x384xf32> to vector<8x384xf32>
    %64 = vector.shape_cast %61 : vector<8x384xf32> to vector<1x8x384xf32>
    tpu.vector_store %arg6[%c0_31, %c0_32, %c0_33], %64 {strides = array<i32>} : memref<1x8x384xf32, #tpu.memory_space<vmem>>, vector<1x8x384xf32>,
    return
  }
  func.func @transform_0(%arg0: i32, %arg1: i32, %arg2: i32) -> (i32, i32, i32) {
    %c0_i32 = arith.constant 0 : i32
    %c0_i32_0 = arith.constant 0 : i32
    %c0_i32_1 = arith.constant 0 : i32
    return %c0_i32, %arg1, %c0_i32_0 : i32, i32, i32
  }
  func.func @transform_1(%arg0: i32, %arg1: i32, %arg2: i32) -> (i32, i32) {
    %c0_i32 = arith.constant 0 : i32
    %c0_i32_0 = arith.constant 0 : i32
    return %arg1, %c0_i32 : i32, i32
  }
  func.func @transform_2(%arg0: i32, %arg1: i32, %arg2: i32) -> (i32, i32, i32) {
    %c0_i32 = arith.constant 0 : i32
    %c0_i32_0 = arith.constant 0 : i32
    %c0_i32_1 = arith.constant 0 : i32
    return %arg0, %c0_i32, %c0_i32_0 : i32, i32, i32
  }
  func.func @transform_3(%arg0: i32, %arg1: i32, %arg2: i32) -> (i32, i32, i32) {
    %c0_i32 = arith.constant 0 : i32
    return %arg0, %arg1, %arg2 : i32, i32, i32
  }
}

</mosaic_0001>

<bundles_post_ra>
// kernel: spectral_norm_conv_forward.2
= control target key start
LH: loop header
LB: loop body
LE: loop exit
PB: predicated region body
PF: predicated region fallthrough
CT: control target
= control target key end

     0   :  { %10 = vsyncpa [#allocation3], 0  ;;  %vm18_vm0 = vcmask 64512   ;;  %v393_v2 = vmov 0.0   ;;  %vm394_vm1 = vmmov 0   ;;  %s472_s0 = inlined_call_operand.vmem [shape: f32[8,36], index: 0, kind: input, shape index: {}]   ;;  %s473_s1 = inlined_call_operand.vmem [shape: f32[1,8], index: 1, kind: input, shape index: {}]   ;;  %s474_s2 = inlined_call_operand.hbm [shape: f32[1,8], index: 2, kind: output, shape index: {0}]   ;;  %s475_s3 = inlined_call_operand.hbm [shape: f32[1,36], index: 3, kind: output, shape index: {1}]   ;;  %s476_s4 = inlined_call_operand.hbm [shape: f32[1,1], index: 4, kind: output, shape index: {2}]  }
   0x1   :  { %v16_v0 = vld [vmem:[%s472_s0] sm:$0xff]  ;;  %286 = vmatprep.subr.mxu0 %v393_v2  ;;  %288 = vmatprep.mubr.msk.f32.mxu0 %vm394_vm1, %v393_v2 }
   0x2   :  { %v17_v1 = vld [vmem:[%s473_s1] sm:$0x1] }
   0x3   :  { %11 = vsyncpa [#allocation5], 0  ;;  %287 = vmatpush3.msra.mxu0 %v16_v0  ;;  %291 = vmatprep.subr.mxu1 %v393_v2  ;;  %vm93_vm2 = vcmask 286720   ;;  %vm117_vm3 = vcmask 293888   ;;  %vm195_vm6 = vcmask 57344   ;;  %s395_s23 = smov [#allocation4]  }
   0x4   :  { %289 = vmatmul.mubr.msk.f32.vlgmr.msra.gmra.mrb[0].mxu0 %vm18_vm0, %v17_v1  ;;  %293 = vmatprep.mubr.msk.f32.mxu1 %vm394_vm1, %v393_v2  ;;  %s254_s24 = sshll.u32 %s395_s23, 4  ;;  %s396_s25 = smov [#allocation2]   ;;  %s255_s24 = int_to_ptr.vmem [resolvable:$true] %s254_s24 }
   0x5   :  { %292 = vmatpush3.xpose.msk.msra.mxu1 %vm117_vm3, %v16_v0  ;;  %s244_s26 = sshll.u32 %s396_s25, 4  ;;  %s323_s27 = scalar_lea.vmem %s255_s24, 16  ;;  %s245_s26 = int_to_ptr.vmem [resolvable:$true] %s244_s26 }
   0x6   :  { %p324_p0 = scmp.ne.s32.totalorder %s255_s24, %s323_s27  ;;  %s327_s28 = scalar_lea.vmem %s255_s24, 32 }
   0x7   :  { %p328_p1 = scmp.lt.s32.totalorder %s255_s24, %s255_s24  ;;  %p329_p2 = scmp.lt.s32.totalorder %s327_s28, %s323_s27 }
   0x9   :  { %p330_p3 = por %p329_p2, %p328_p1 }
   0xb   :  { %p331_p4 = pnand %p330_p3, %p324_p0 }
  0xd7   :  { %v88_v3 = vpop.f32.mrb[0].mxu0 }
  0xd8   :  { %v290_v4 = vpop.f32.mrb[1].mxu0  ;;  %v92_v5 = vmul.f32 %v88_v3, %v88_v3 }
  0xda   :  { %v94_v6 = vsel %vm93_vm2, %v92_v5, 0.0 }
  0xdb   :  { %95 = vadd.xlane.f32.xlu0 %v94_v6 }
 0x168   :  { %v96_v7 = vpop.xlane.xlu0 %95 }
 0x169   :  { %v97_v8 = vrot.slane %v96_v7, 4 }
 0x16b   :  { %v98_v9 = vadd.f32 %v97_v8, %v96_v7 }
 0x16d   :  { %v99_v10 = vrot.slane %v98_v9, 2 }
 0x16f   :  { %v100_v11 = vadd.f32 %v99_v10, %v98_v9 }
 0x171   :  { %v101_v12 = vrot.slane %v100_v11, 1 }
 0x173   :  { %v102_v13 = vadd.f32 %v101_v12, %v100_v11 }
 0x175   :  { %296 = vpush %v102_v13 }
 0x1a6   :  { %s297_s0 = spop %296 }
 0x1a7   :  { %v104_v14 = vstv %s297_s0 }
 0x1a8   :  { %313 = vrsqrt.f32 %v104_v14  ;;  %vm107_vm4 = vcmp.eq.f32.partialorder %v104_v14, inf  ;;  %v110_v17 = vand.u32 2147483648, %v104_v14  ;;  %vm109_vm5 = vcmp.eq.f32.partialorder %v104_v14, 0.0 }
 0x1b2   :  { %v314_v15 = vpop.eup %313 }
 0x1b3   :  { %v106_v16 = vmul.f32 %v314_v15, %v104_v14 }
 0x1b5   :  { %v108_v18 = vsel %vm107_vm4, %v104_v14, %v106_v16 }
 0x1b6   :  { %v111_v19 = vsel %vm109_vm5, %v110_v17, %v108_v18 }
 0x1b7   :  { %298 = vpush %v111_v19 }
 0x1e8   :  { %s299_s1 = spop %298 }
 0x1e9   :  { %s113_s19 = sadd.f32 1e-12, %s299_s1 }
 0x1eb   :  { %v114_v20 = vstv %s113_s19 }
 0x1ec   :  { %315 = vrcp.f32 %v114_v20 }
 0x1f6   :  { %v316_v21 = vpop.eup %315 }
 0x1f7   :  { %v116_v22 = vmul.f32 %v316_v21, %v88_v3 }
 0x1f9   :  { %294 = vmatmul.mubr.msk.f32.vlgmr.msra.gmra.mrb[0].mxu1 %vm117_vm3, %v116_v22  ;;  %231 = vst.msk [vmem:[#allocation4] sm:$0x1] %vm93_vm2, %v116_v22 }
 0x2cc   :  { %v190_v23 = vpop.f32.mrb[0].mxu1 }
 0x2cd   :  { %v295_v24 = vpop.f32.mrb[1].mxu1  ;;  %v194_v25 = vmul.f32 %v190_v23, %v190_v23 }
 0x2cf   :  { %v196_v26 = vsel %vm195_vm6, %v194_v25, 0.0 }
 0x2d0   :  { %197 = vadd.xlane.f32.xlu0 %v196_v26 }
 0x35d   :  { %v198_v27 = vpop.xlane.xlu0 %197 }
 0x35e   :  { %v199_v28 = vrot.slane %v198_v27, 4 }
 0x360   :  { %v200_v29 = vadd.f32 %v199_v28, %v198_v27 }
 0x362   :  { %v201_v30 = vrot.slane %v200_v29, 2 }
 0x364   :  { %v202_v31 = vadd.f32 %v201_v30, %v200_v29 }
 0x366   :  { %v203_v32 = vrot.slane %v202_v31, 1 }
 0x368   :  { %v204_v33 = vadd.f32 %v203_v32, %v202_v31 }
 0x36a   :  { %300 = vpush %v204_v33 }
 0x39b   :  { %s301_s20 = spop %300 }
 0x39c   :  { %v206_v34 = vstv %s301_s20 }
 0x39d   :  { %317 = vrsqrt.f32 %v206_v34  ;;  %vm209_vm7 = vcmp.eq.f32.partialorder %v206_v34, inf  ;;  %v212_v37 = vand.u32 2147483648, %v206_v34  ;;  %vm211_vm8 = vcmp.eq.f32.partialorder %v206_v34, 0.0 }
 0x3a7   :  { %v318_v35 = vpop.eup %317 }
 0x3a8   :  { %v208_v36 = vmul.f32 %v318_v35, %v206_v34 }
 0x3aa   :  { %v210_v38 = vsel %vm209_vm7, %v206_v34, %v208_v36 }
 0x3ab   :  { %v213_v39 = vsel %vm211_vm8, %v212_v37, %v210_v38 }
 0x3ac   :  { %302 = vpush %v213_v39 }
 0x3dd   :  { %s303_s21 = spop %302 }
 0x3de   :  { %s215_s22 = sadd.f32 1e-12, %s303_s21 }
 0x3e0   :  { %v216_v40 = vstv %s215_s22 }
 0x3e1   :  { %319 = vrcp.f32 %v216_v40 }
 0x3eb   :  { %v320_v41 = vpop.eup %319 }
 0x3ec   :  { %v218_v42 = vmul.f32 %v320_v41, %v190_v23 }
 0x3ee   :  { %v219_v43 = vmul.f32 %v218_v42, %v190_v23  ;;  %230 = vst.msk [vmem:[#allocation2] sm:$0x1] %vm195_vm6, %v218_v42 }
 0x3f0   :  { %v220_v44 = vsel %vm195_vm6, %v219_v43, 0.0 }
 0x3f1   :  { %221 = vadd.xlane.f32.xlu1 %v220_v44 }
 0x3f2   :  { %334 = shalt.err (!%p331_p4)
}
 0x3f3   :  { %s335_s5 = scalar_lea.hbm %s475_s3, 16 }
 0x3f4   :  { %p336_p5 = scmp.ne.s32.totalorder %s475_s3, %s335_s5  ;;  %p339_p6 = scmp.lt.u32.totalorder %s335_s5, %s475_s3 }
 0x3f6   :  { %p341_p7 = pnand %p339_p6, %p336_p5 }
 0x3f8   :  { %344 = shalt.err (!%p341_p7)
}
 0x3f9   :  { %257 = dma.vmem_to_hbm [thread:$0]  %s255_s24, 16, %s475_s3, [#allocation5]  }
 0x3fa   :  { %s345_s12 = scalar_lea.vmem %s245_s26, 16  ;;  %s349_s13 = scalar_lea.vmem %s245_s26, 32 }
 0x3fb   :  { %p346_p8 = scmp.ne.s32.totalorder %s245_s26, %s345_s12  ;;  %p350_p9 = scmp.lt.s32.totalorder %s245_s26, %s245_s26 }
 0x3fc   :  { %p351_p10 = scmp.lt.s32.totalorder %s349_s13, %s345_s12 }
 0x3fe   :  { %p352_p11 = por %p351_p10, %p350_p9 }
 0x400   :  { %p353_p12 = pnand %p352_p11, %p346_p8 }
 0x47e   :  { %v222_v45 = vpop.xlane.xlu1 %221 }
 0x47f   :  { %356 = shalt.err (!%p353_p12)
}
 0x480   :  { %s357_s16 = scalar_lea.hbm %s474_s2, 16 }
 0x481   :  { %p358_p13 = scmp.ne.s32.totalorder %s474_s2, %s357_s16  ;;  %p361_p0 = scmp.lt.u32.totalorder %s357_s16, %s474_s2 }
 0x483   :  { %p363_p1 = pnand %p361_p0, %p358_p13 }
 0x485   :  { %366 = shalt.err (!%p363_p1)
}
 0x486   :  { %247 = dma.vmem_to_hbm [thread:$0]  %s245_s26, 16, %s474_s2, [#allocation3]   ;;  %v223_v46 = vrot.slane %v222_v45, 4  ;;  %vm236_vm9 = vcmask 0  }
 0x487   :  { %s397_s21 = smov [#allocation6]  }
 0x488   :  { %v224_v47 = vadd.f32 %v223_v46, %v222_v45  ;;  %s264_s22 = sshll.u32 %s397_s21, 4  ;;  %s265_s22 = int_to_ptr.vmem [resolvable:$true] %s264_s22 }
 0x489   :  { %s367_s2 = scalar_lea.vmem %s265_s22, 16  ;;  %s371_s24 = scalar_lea.vmem %s265_s22, 32 }
 0x48a   :  { %v225_v48 = vrot.slane %v224_v47, 2  ;;  %p368_p2 = scmp.ne.s32.totalorder %s265_s22, %s367_s2  ;;  %p372_p3 = scmp.lt.s32.totalorder %s265_s22, %s265_s22 }
 0x48b   :  { %p373_p4 = scmp.lt.s32.totalorder %s371_s24, %s367_s2 }
 0x48c   :  { %v226_v49 = vadd.f32 %v225_v48, %v224_v47 }
 0x48d   :  { %p374_p5 = por %p373_p4, %p372_p3 }
 0x48e   :  { %v227_v50 = vrot.slane %v226_v49, 1 }
 0x48f   :  { %p375_p6 = pnand %p374_p5, %p368_p2 }
 0x490   :  { %v228_v51 = vadd.f32 %v227_v50, %v226_v49 }
 0x492   :  { %304 = vpush %v228_v51 }
 0x4c3   :  { %s305_s20 = spop %304 }
 0x4c4   :  { %v232_v52 = vstv %s305_s20 }
 0x4c5   :  { %321 = vrcp.f32 %v232_v52 }
 0x4cf   :  { %v322_v53 = vpop.eup %321 }
 0x4d0   :  { %306 = vpush %v322_v53 }
 0x501   :  { %s307_s23 = spop %306 }
 0x502   :  { %v235_v54 = vstv %s307_s23 }
 0x503   :  { %237 = vst.msk [vmem:[#allocation6] sm:$0x1] %vm236_vm9, %v235_v54 }
 0x504   :  { %378 = shalt.err (!%p375_p6)
}
 0x505   :  { %s379_s27 = scalar_lea.hbm %s476_s4, 16 }
 0x506   :  { %p380_p7 = scmp.ne.s32.totalorder %s476_s4, %s379_s27  ;;  %p383_p8 = scmp.lt.u32.totalorder %s379_s27, %s476_s4 }
 0x508   :  { %p385_p9 = pnand %p383_p8, %p380_p7 }
 0x50a   :  { %388 = shalt.err (!%p385_p9)
}
 0x50b   :  { %267 = dma.vmem_to_hbm [thread:$0]  %s265_s22, 16, %s476_s4, [#allocation5]  }
 0x50c   :  { %389 = dma.done.wait [#allocation3], 16  }
 0x50d   :  { %390 = vsyncadd [#allocation3], 4294967280 }
 0x50e   :  { %391 = dma.done.wait [#allocation5], 32  }
 0x50f   :  { %392 = vsyncadd [#allocation5], 4294967264 }
 0x510   :  { %277 = vsyncpa [#allocation3], 1 }
 0x511   :  { %278 = vsyncpa [#allocation5], 1 }

// kernel: spectral_norm_conv_forward.3
= control target key start
LH: loop header
LB: loop body
LE: loop exit
PB: predicated region body
PF: predicated region fallthrough
CT: control target
= control target key end

     0   :  { %s2152_s12 = smov 0   ;;  %s2154_s13 = smov 0   ;;  %s2389_s0 = inlined_call_operand.vmem [shape: f32[9,8,4], index: 0, kind: input, shape index: {}]   ;;  %s2390_s1 = inlined_call_operand.vmem [shape: f32[8,1], index: 1, kind: input, shape index: {}]   ;;  %s2391_s2 = inlined_call_operand.vmem [shape: f32[2,4,522], index: 2, kind: input, shape index: {}]   ;;  %s2392_s3 = inlined_call_operand.vmem [shape: f32[2,8,384], index: 3, kind: output, shape index: {}]  }
   0x1   :  { %s2156_s14 = smov 0  }
   0x2 LB: > { %s32_s15 = sadd.s32 1, %s2115_s13  ;;  %p1920_p0 = scmp.ge.s32.totalorder %s2119_s14, 1  ;;  %s2119_s14 = sphi %s2156_s14, %s13_s14   ;;  %s2115_s13 = sphi %s2154_s13, %s2394_s13   ;;  %s2111_s12 = sphi %s2152_s12, %s2393_s12  }
   0x3   : > { %p34_p1 = scmp.ge.s32.totalorder %s32_s15, 2  ;;  %p178_p2 = scmp.lt.s32.totalorder %s2119_s14, 3 }
   0x5   : > { %s2396_s15 = smov (%p34_p1, %s32_s15), 0  ;;  %p179_p3 = pnand %p1920_p0, %p178_p2 }
   0x6   : > { %p226_p4 = scmp.lt.s32.totalorder (!%p179_p3), %s2111_s12, 1  ;;  %v2121_v0 = vmov (!%p179_p3), 0.0   ;;  %s2122_s20 = smov (!%p179_p3), 127   ;;  %vm2124_vm0 = vmmov (!%p179_p3), 0   ;;  %v2131_v5 = vmov (!%p179_p3), 0   ;;  %v1770_v6 = vld [vmem:[%s2390_s1] sm:$0xff] (!%p179_p3)  ;;  %v267_v7 = vlaneseq (!%p179_p3) }
   0x7   : > { %182 = sbr.rel (%p179_p3) target bundleno = 423 (0x1a7), region = 32  ;;  %353 = vmatprep.mubr.f32.mxu0 (!%p179_p3), %v2121_v0  ;;  %1996 = vmatprep.subr.mxu1 (!%p179_p3), %v2121_v0  ;;  %s2123_s21 = smov (!%p179_p3), 126   ;;  %vm279_vm2 = vcmask (!%p179_p3), 1043456   ;;  %v1923_v14 = vld [vmem:[%s2389_s0 + $0x8] sm:$0xff] (!%p179_p3)  ;;  %vm275_vm3 = vcmask (!%p179_p3), 31744   ;;  %v252_v21 = vld [vmem:[%s2389_s0] sm:$0xff] (!%p179_p3) }
   0x8   : > { %1998 = vmatprep.mubr.msk.f32.mxu1 (!%p179_p3), %vm2124_vm0, %v2121_v0  ;;  %s2125_s22 = smov (!%p179_p3), 110   ;;  %s2126_s23 = smov (!%p179_p3), 109   ;;  %2094 = vset.pattern.permute.xlu0 (!%p179_p3), %v2131_v5  ;;  %v2217_v9 = vand.u32 (!%p179_p3), 127, %v267_v7  ;;  %v1934_v29 = vld [vmem:[%s2389_s0 + $0x10] sm:$0xff] (!%p179_p3)  ;;  %v1940_v37 = vld [vmem:[%s2389_s0 + $0x18] sm:$0xff] (!%p179_p3)  ;;  %v1946_v46 = vld [vmem:[%s2389_s0 + $0x20] sm:$0xff] (!%p179_p3) }
   0x9   : > { %s2127_s24 = smov (!%p179_p3), 108   ;;  %s2128_s25 = smov (!%p179_p3), 92   ;;  %v1952_v53 = vld [vmem:[%s2389_s0 + $0x28] sm:$0xff] (!%p179_p3)  ;;  %v1958_v59 = vld [vmem:[%s2389_s0 + $0x30] sm:$0xff] (!%p179_p3) }
   0xa   : > { %s2129_s26 = smov (!%p179_p3), 91   ;;  %s2130_s27 = smov (!%p179_p3), 90   ;;  %vm269_vm1 = vcmp.lt.s32.totalorder (!%p179_p3), %v2217_v9, 127  ;;  %vm588_vm4 = vcmp.lt.s32.totalorder (!%p179_p3), %v2217_v9, 126  ;;  %vm758_vm5 = vcmp.lt.s32.totalorder (!%p179_p3), %v2217_v9, 110  ;;  %vm928_vm6 = vcmp.lt.s32.totalorder (!%p179_p3), %v2217_v9, 109 }
   0xb   : > { %vm1098_vm7 = vcmp.lt.s32.totalorder (!%p179_p3), %v2217_v9, 108  ;;  %vm1268_vm8 = vcmp.lt.s32.totalorder (!%p179_p3), %v2217_v9, 92  ;;  %vm1438_vm9 = vcmp.lt.s32.totalorder (!%p179_p3), %v2217_v9, 91  ;;  %vm1608_vm10 = vcmp.lt.s32.totalorder (!%p179_p3), %v2217_v9, 90 }
   0xe   : > { %s2398_s12 = smov (!%p226_p4, %s2111_s12), 1 }
   0xf   : > { %s2057_s16 = smul.u32 20, %s2398_s12 }
  0x11   : > { %s230_s19 = scalar_lea.vmem %s2391_s2, %s2057_s16 }
  0x12   : > { %v2178_v1 = vld [vmem:[%s230_s19] sm:$0xff]  ;;  %v2186_v3 = vld [vmem:[%s230_s19 + $0x8] sm:$0xff] }
  0x13   : > { %259 = vrot.lane.b32.xlu1 %v2178_v1, %s2122_s20  ;;  %v2183_v2 = vcombine.high %v2178_v1, %v2178_v1  ;;  %v256_v4 = vcombine.high %v2186_v3, %v2186_v3 }
  0x15   : > { %261 = vrot.lane.b32.xlu0 %v2183_v2, %s2122_s20 }
  0x17   : > { %580 = vrot.lane.b32.xlu1 %v2178_v1, %s2123_s21 }
  0x19   : > { %263 = vrot.lane.b32.xlu0 %v2186_v3, %s2122_s20 }
  0x1b   : > { %582 = vrot.lane.b32.xlu1 %v2183_v2, %s2123_s21 }
  0x1d   : > { %584 = vrot.lane.b32.xlu0 %v2186_v3, %s2123_s21 }
  0x1f   : > { %754 = vrot.lane.b32.xlu1 %v2186_v3, %s2125_s22 }
  0x21   : > { %752 = vrot.lane.b32.xlu0 %v2183_v2, %s2125_s22 }
  0x23   : > { %265 = vrot.lane.b32.xlu1 %v256_v4, %s2122_s20 }
  0x25   : > { %750 = vrot.lane.b32.xlu0 %v2178_v1, %s2125_s22 }
  0x27   : > { %924 = vrot.lane.b32.xlu1 %v2186_v3, %s2126_s23 }
  0x29   : > { %922 = vrot.lane.b32.xlu0 %v2183_v2, %s2126_s23 }
  0x2b   : > { %586 = vrot.lane.b32.xlu1 %v256_v4, %s2123_s21 }
  0x2d   : > { %920 = vrot.lane.b32.xlu0 %v2178_v1, %s2126_s23 }
  0x2f   : > { %1094 = vrot.lane.b32.xlu1 %v2186_v3, %s2127_s24 }
  0x31   : > { %1092 = vrot.lane.b32.xlu0 %v2183_v2, %s2127_s24 }
  0x33   : > { %756 = vrot.lane.b32.xlu1 %v256_v4, %s2125_s22 }
  0x35   : > { %1090 = vrot.lane.b32.xlu0 %v2178_v1, %s2127_s24 }
  0x37   : > { %1262 = vrot.lane.b32.xlu1 %v2183_v2, %s2128_s25 }
  0x39   : > { %926 = vrot.lane.b32.xlu0 %v256_v4, %s2126_s23 }
  0x3b   : > { %1260 = vrot.lane.b32.xlu1 %v2178_v1, %s2128_s25 }
  0x3d   : > { %1264 = vrot.lane.b32.xlu0 %v2186_v3, %s2128_s25 }
  0x3f   : > { %1266 = vrot.lane.b32.xlu1 %v256_v4, %s2128_s25  ;;  %s2058_s25 = smul.u32 24, %s2398_s12 }
  0x41   : > { %1096 = vrot.lane.b32.xlu0 %v256_v4, %s2127_s24  ;;  %s243_s28 = scalar_lea.vmem %s2392_s3, %s2058_s25 }
  0x43   : > { %1434 = vrot.lane.b32.xlu1 %v2186_v3, %s2129_s26 }
  0x45   : > { %1432 = vrot.lane.b32.xlu0 %v2183_v2, %s2129_s26 }
  0x47   : > { %1436 = vrot.lane.b32.xlu1 %v256_v4, %s2129_s26 }
  0x49   : > { %1430 = vrot.lane.b32.xlu0 %v2178_v1, %s2129_s26 }
  0x4b   : > { %1604 = vrot.lane.b32.xlu1 %v2186_v3, %s2130_s27 }
  0x4d   : > { %1602 = vrot.lane.b32.xlu0 %v2183_v2, %s2130_s27 }
  0x4f   : > { %1600 = vrot.lane.b32.xlu1 %v2178_v1, %s2130_s27 }
  0x51   : > { %1606 = vrot.lane.b32.xlu0 %v256_v4, %s2130_s27 }
  0x55   : > { %1773 = vperm.xlu0 %2094, %v1770_v6  }
  0x85   : > { %v260_v8 = vpop.permute.xlu1 %259 }
  0x87   : > { %v262_v10 = vpop.permute.xlu0 %261 }
  0x88   : > { %v272_v16 = vsel %vm269_vm1, %v260_v8, %v262_v10  ;;  %v1970_v8 = vld [vmem:[%s2389_s0 + $0x40] sm:$0xff] }
  0x89   : > { %v581_v11 = vpop.permute.xlu1 %580 }
  0x8b   : > { %v264_v12 = vpop.permute.xlu0 %263 }
  0x8c   : > { %v271_v13 = vsel %vm269_vm1, %v262_v10, %v264_v12 }
  0x8d   : > { %v583_v15 = vpop.permute.xlu1 %582  ;;  %1924 = vmatprep.subr.msk.mxu0 %vm279_vm2, %v271_v13 }
  0x8e   : > { %1925 = vmatpush1.msk.msra.mxu0 %vm279_vm2, %v272_v16  ;;  %v591_v22 = vsel %vm588_vm4, %v581_v11, %v583_v15 }
  0x8f   : > { %1926 = vmatmul.mubr.msk.f32.vlgmr.msra.gmra.mrb[0].mxu0 %vm275_vm3, %v1923_v14  ;;  %1929 = vmatprep.subr.msk.mxu0 %vm279_vm2, %v2183_v2  ;;  %v585_v17 = vpop.permute.xlu0 %584 }
  0x90   : > { %v590_v18 = vsel %vm588_vm4, %v583_v15, %v585_v17  ;;  %1930 = vmatpush1.msk.msra.mxu0 %vm279_vm2, %v2178_v1  ;;  %503 = vmatprep.mubr.f32.mxu0 %v2121_v0  ;;  %v1964_v1 = vld [vmem:[%s2389_s0 + $0x38] sm:$0xff] }
  0x91   : > { %v755_v19 = vpop.permute.xlu1 %754  ;;  %1935 = vmatprep.subr.msk.mxu0 %vm279_vm2, %v590_v18 }
  0x93   : > { %v753_v20 = vpop.permute.xlu0 %752 }
  0x94   : > { %v760_v24 = vsel %vm758_vm5, %v753_v20, %v755_v19 }
  0x95   : > { %v266_v23 = vpop.permute.xlu1 %265 }
  0x96   : > { %v270_v25 = vsel %vm269_vm1, %v264_v12, %v266_v23 }
  0x97   : > { %1997 = vmatpush3.msk.msra.mxu1 %vm279_vm2, %v270_v25  ;;  %1931 = vmatmul.mubr.msk.f32.vlgmr.msra.gmra.mrb[0].mxu0 %vm275_vm3, %v252_v21  ;;  %v751_v26 = vpop.permute.xlu0 %750 }
  0x98   : > { %1936 = vmatpush1.msk.msra.mxu0 %vm279_vm2, %v591_v22  ;;  %1999 = vmatmul.mubr.msk.f32.vlgmr.msra.gmra.mrb[0].mxu1 %vm275_vm3, %v1923_v14  ;;  %v761_v33 = vsel %vm758_vm5, %v751_v26, %v753_v20 }
  0x99   : > { %1941 = vmatprep.subr.msk.mxu0 %vm279_vm2, %v760_v24  ;;  %v925_v27 = vpop.permute.xlu1 %924  ;;  %2001 = vmatprep.subr.mxu1 %v2121_v0 }
  0x9a   : > { %2002 = vmatpush3.msk.msra.mxu1 %vm279_vm2, %v2186_v3  ;;  %2003 = vmatprep.mubr.msk.f32.mxu1 %vm2124_vm0, %v2121_v0 }
  0x9b   : > { %v923_v28 = vpop.permute.xlu0 %922  ;;  %670 = vmatprep.mubr.f32.mxu0 %v2121_v0  ;;  %2006 = vmatprep.subr.mxu1 %v2121_v0 }
  0x9c   : > { %2004 = vmatmul.mubr.msk.f32.vlgmr.msra.gmra.mrb[2].mxu1 %vm275_vm3, %v252_v21  ;;  %v930_v31 = vsel %vm928_vm6, %v923_v28, %v925_v27 }
  0x9d   : > { %v587_v30 = vpop.permute.xlu1 %586  ;;  %2008 = vmatprep.mubr.msk.f32.mxu1 %vm2124_vm0, %v2121_v0 }
  0x9e   : > { %v589_v32 = vsel %vm588_vm4, %v585_v17, %v587_v30 }
  0x9f   : > { %1937 = vmatmul.mubr.msk.f32.vlgmr.msra.gmra.mrb[0].mxu0 %vm275_vm3, %v1934_v29  ;;  %2007 = vmatpush3.msk.msra.mxu1 %vm279_vm2, %v589_v32  ;;  %v921_v34 = vpop.permute.xlu0 %920 }
  0xa0   : > { %1942 = vmatpush1.msk.msra.mxu0 %vm279_vm2, %v761_v33  ;;  %840 = vmatprep.mubr.f32.mxu0 %v2121_v0  ;;  %v931_v41 = vsel %vm928_vm6, %v921_v34, %v923_v28 }
  0xa1   : > { %1947 = vmatprep.subr.msk.mxu0 %vm279_vm2, %v930_v31  ;;  %v1095_v35 = vpop.permute.xlu1 %1094  ;;  %2011 = vmatprep.subr.mxu1 %v2121_v0 }
  0xa2   : > { %2009 = vmatmul.mubr.msk.f32.vlgmr.msra.gmra.mrb[4].mxu1 %vm275_vm3, %v1934_v29 }
  0xa3   : > { %v1093_v36 = vpop.permute.xlu0 %1092  ;;  %2013 = vmatprep.mubr.msk.f32.mxu1 %vm2124_vm0, %v2121_v0 }
  0xa4   : > { %v1100_v39 = vsel %vm1098_vm7, %v1093_v36, %v1095_v35 }
  0xa5   : > { %v757_v38 = vpop.permute.xlu1 %756 }
  0xa6   : > { %v759_v40 = vsel %vm758_vm5, %v755_v19, %v757_v38 }
  0xa7   : > { %1943 = vmatmul.mubr.msk.f32.vlgmr.msra.gmra.mrb[0].mxu0 %vm275_vm3, %v1940_v37  ;;  %2012 = vmatpush3.msk.msra.mxu1 %vm279_vm2, %v759_v40  ;;  %v1091_v42 = vpop.permute.xlu0 %1090 }
  0xa8   : > { %1948 = vmatpush1.msk.msra.mxu0 %vm279_vm2, %v931_v41  ;;  %2016 = vmatprep.subr.mxu1 %v2121_v0  ;;  %v1101_v48 = vsel %vm1098_vm7, %v1091_v42, %v1093_v36 }
  0xa9   : > { %1953 = vmatprep.subr.msk.mxu0 %vm279_vm2, %v1100_v39  ;;  %v1263_v43 = vpop.permute.xlu1 %1262  ;;  %2014 = vmatmul.mubr.msk.f32.vlgmr.msra.gmra.mrb[6].mxu1 %vm275_vm3, %v1940_v37 }
  0xaa   : > { %1010 = vmatprep.mubr.f32.mxu0 %v2121_v0  ;;  %2018 = vmatprep.mubr.msk.f32.mxu1 %vm2124_vm0, %v2121_v0 }
  0xab   : > { %v927_v44 = vpop.permute.xlu0 %926 }
  0xac   : > { %v929_v45 = vsel %vm928_vm6, %v925_v27, %v927_v44 }
  0xad   : > { %2017 = vmatpush3.msk.msra.mxu1 %vm279_vm2, %v929_v45  ;;  %v1261_v47 = vpop.permute.xlu1 %1260 }
  0xae   : > { %2019 = vmatmul.mubr.msk.f32.vlgmr.msra.gmra.mrb[8].mxu1 %vm275_vm3, %v1946_v46  ;;  %2021 = vmatprep.subr.mxu1 %v2121_v0  ;;  %v1271_v56 = vsel %vm1268_vm8, %v1261_v47, %v1263_v43 }
  0xaf   : > { %1949 = vmatmul.mubr.msk.f32.vlgmr.msra.gmra.mrb[0].mxu0 %vm275_vm3, %v1946_v46  ;;  %v1265_v49 = vpop.permute.xlu0 %1264  ;;  %2023 = vmatprep.mubr.msk.f32.mxu1 %vm2124_vm0, %v2121_v0 }
  0xb0   : > { %1954 = vmatpush1.msk.msra.mxu0 %vm279_vm2, %v1101_v48  ;;  %v1270_v50 = vsel %vm1268_vm8, %v1263_v43, %v1265_v49  ;;  %1180 = vmatprep.mubr.f32.mxu0 %v2121_v0 }
  0xb1   : > { %1959 = vmatprep.subr.msk.mxu0 %vm279_vm2, %v1270_v50  ;;  %v1267_v51 = vpop.permute.xlu1 %1266 }
  0xb2   : > { %v1269_v54 = vsel %vm1268_vm8, %v1265_v49, %v1267_v51 }
  0xb3   : > { %v1097_v52 = vpop.permute.xlu0 %1096 }
  0xb4   : > { %v1099_v55 = vsel %vm1098_vm7, %v1095_v35, %v1097_v52 }
  0xb5   : > { %2022 = vmatpush3.msk.msra.mxu1 %vm279_vm2, %v1099_v55  ;;  %v1435_v57 = vpop.permute.xlu1 %1434 }
  0xb6   : > { %2024 = vmatmul.mubr.msk.f32.vlgmr.msra.gmra.mrb[10].mxu1 %vm275_vm3, %v1952_v53  ;;  %2026 = vmatprep.subr.mxu1 %v2121_v0 }
  0xb7   : > { %1955 = vmatmul.mubr.msk.f32.vlgmr.msra.gmra.mrb[0].mxu0 %vm275_vm3, %v1952_v53  ;;  %2027 = vmatpush3.msk.msra.mxu1 %vm279_vm2, %v1269_v54  ;;  %v1433_v58 = vpop.permute.xlu0 %1432 }
  0xb8   : > { %1960 = vmatpush1.msk.msra.mxu0 %vm279_vm2, %v1271_v56  ;;  %v1440_v60 = vsel %vm1438_vm9, %v1433_v58, %v1435_v57  ;;  %2028 = vmatprep.mubr.msk.f32.mxu1 %vm2124_vm0, %v2121_v0 }
  0xb9   : > { %v1437_v61 = vpop.permute.xlu1 %1436  ;;  %2031 = vmatprep.subr.mxu1 %v2121_v0  ;;  %1965 = vmatprep.subr.msk.mxu0 %vm279_vm2, %v1440_v60 }
  0xba   : > { %v1439_v62 = vsel %vm1438_vm9, %v1435_v57, %v1437_v61  ;;  %2029 = vmatmul.mubr.msk.f32.vlgmr.msra.gmra.mrb[12].mxu1 %vm275_vm3, %v1958_v59  ;;  %1350 = vmatprep.mubr.f32.mxu0 %v2121_v0 }
  0xbb   : > { %v1431_v63 = vpop.permute.xlu0 %1430  ;;  %2032 = vmatpush3.msk.msra.mxu1 %vm279_vm2, %v1439_v62  ;;  %2033 = vmatprep.mubr.msk.f32.mxu1 %vm2124_vm0, %v2121_v0 }
  0xbc   : > { %2036 = vmatprep.subr.mxu1 %v2121_v0  ;;  %v1441_v2 = vsel %vm1438_vm9, %v1431_v63, %v1433_v58 }
  0xbd   : > { %v1605_v3 = vpop.permute.xlu1 %1604 }
  0xbe   : > { %2034 = vmatmul.mubr.msk.f32.vlgmr.msra.gmra.mrb[14].mxu1 %vm275_vm3, %v1964_v1 }
  0xbf   : > { %1961 = vmatmul.mubr.msk.f32.vlgmr.msra.gmra.mrb[0].mxu0 %vm275_vm3, %v1958_v59  ;;  %v1603_v4 = vpop.permute.xlu0 %1602  ;;  %2038 = vmatprep.mubr.msk.f32.mxu1 %vm2124_vm0, %v2121_v0 }
  0xc0   : > { %1966 = vmatpush1.msk.msra.mxu0 %vm279_vm2, %v1441_v2  ;;  %v1610_v5 = vsel %vm1608_vm10, %v1603_v4, %v1605_v3  ;;  %1520 = vmatprep.mubr.f32.mxu0 %v2121_v0 }
  0xc1   : > { %1971 = vmatprep.subr.msk.mxu0 %vm279_vm2, %v1610_v5  ;;  %v1601_v6 = vpop.permute.xlu1 %1600 }
  0xc2   : > { %v1611_v11 = vsel %vm1608_vm10, %v1601_v6, %v1603_v4 }
  0xc3   : > { %v1607_v7 = vpop.permute.xlu0 %1606 }
  0xc4   : > { %v1609_v10 = vsel %vm1608_vm10, %v1605_v3, %v1607_v7 }
  0xc5   : > { %2037 = vmatpush3.msk.msra.mxu1 %vm279_vm2, %v1609_v10 }
  0xc6   : > { %2039 = vmatmul.mubr.msk.f32.vlgmr.msra.gmra.mrb[16].mxu1 %vm275_vm3, %v1970_v8 }
  0xc7   : > { %1967 = vmatmul.mubr.msk.f32.vlgmr.msra.gmra.mrb[0].mxu0 %vm275_vm3, %v1964_v1 }
  0xc8   : > { %1972 = vmatpush1.msk.msra.mxu0 %vm279_vm2, %v1611_v11  ;;  %1690 = vmatprep.mubr.f32.mxu0 %v2121_v0 }
  0xcf   : > { %1973 = vmatmul.mubr.msk.f32.vlgmr.msra.gmra.mrb[0].mxu0 %vm275_vm3, %v1970_v8 }
  0xd4   : > { %v1774_v34 = vpop.permute.xlu0 %1773 }
 0x16b   : > { %v426_v9 = vpop.f32.mrb[0].mxu1 }
 0x16c   : > { %v2000_v12 = vpop.f32.mrb[1].mxu1 }
 0x16f   : > { %v576_v13 = vpop.f32.mrb[2].mxu1 }
 0x170   : > { %v577_v14 = vadd.f32 %v576_v13, %v426_v9  ;;  %v2005_v15 = vpop.f32.mrb[3].mxu1 }
 0x175   : > { %v743_v16 = vpop.f32.mrb[4].mxu1 }
 0x176   : > { %v749_v17 = vadd.f32 %v743_v16, %v577_v14  ;;  %v2010_v18 = vpop.f32.mrb[5].mxu1 }
 0x17c   : > { %v913_v19 = vpop.f32.mrb[6].mxu1 }
 0x17d   : > { %v919_v20 = vadd.f32 %v913_v19, %v749_v17  ;;  %v2015_v21 = vpop.f32.mrb[7].mxu1 }
 0x181   : > { %v1083_v22 = vpop.f32.mrb[8].mxu1 }
 0x182   : > { %v1089_v23 = vadd.f32 %v1083_v22, %v919_v20  ;;  %v2020_v24 = vpop.f32.mrb[9].mxu1 }
 0x189   : > { %v1253_v25 = vpop.f32.mrb[10].mxu1 }
 0x18a   : > { %v1259_v26 = vadd.f32 %v1253_v25, %v1089_v23  ;;  %v2025_v0 = vpop.f32.mrb[11].mxu1 }
 0x18d   : > { %v1423_v27 = vpop.f32.mrb[12].mxu1 }
 0x18e   : > { %v1429_v28 = vadd.f32 %v1423_v27, %v1259_v26  ;;  %v2030_v29 = vpop.f32.mrb[13].mxu1 }
 0x191   : > { %v1593_v30 = vpop.f32.mrb[14].mxu1 }
 0x192   : > { %v1599_v31 = vadd.f32 %v1593_v30, %v1429_v28  ;;  %v2035_v32 = vpop.f32.mrb[15].mxu1 }
 0x199   : > { %v1763_v33 = vpop.f32.mrb[16].mxu1 }
 0x19a   : > { %v1769_v35 = vadd.f32 %v1763_v33, %v1599_v31  ;;  %v2040_v36 = vpop.f32.mrb[17].mxu1 }
 0x19c   : > { %v1778_v37 = vadd.f32 %v1774_v34, %v1769_v35 }
 0x19e   : > { %1781 = vst [vmem:[%s243_s28 + $0x10] sm:$0xff] %v1778_v37 }
 0x1a2   : > { %v1692_v38 = vpop.f32.mrb[0].mxu0 }
 0x1a3   : > { %v1776_v39 = vadd.f32 %v1774_v34, %v1692_v38  ;;  %v1694_v40 = vpop.f32.mrb[1].mxu0 }
 0x1a4   : > { %v1777_v41 = vadd.f32 %v1774_v34, %v1694_v40 }
 0x1a5   : > { %1779 = vst [vmem:[%s243_s28] sm:$0xff] %v1776_v39 }
 0x1a6   : > { %1780 = vst [vmem:[%s243_s28 + $0x8] sm:$0xff] %v1777_v41 }
 0x1a7 PF: > { %s13_s14 = sadd.s32 1, %s2119_s14   ;;  %s2393_s12 = smov %s2115_s13 }
 0x1a8   : > { %p10_p5 = scmp.ge.s32.totalorder %s13_s14, 4   ;;  %s2394_s13 = smov %s2396_s15 }
 0x1aa   :  { %12 = sbr.rel (!%p10_p5) target bundleno = 2 (0x2), region = 77 }

</bundles_post_ra>
